<compile_context>
chip_gen: v6e
topology: v6e:2x2x1
jax: 0.10.0
libtpu: 0.0.40
codegen_flags: <defaults>
</compile_context>

<pallas_src>
import jax
import jax.numpy as jnp
from jax.experimental import pallas as pl
from jax.experimental.pallas import tpu as pltpu

# ----------------------------------------------------------------------------
# Model dimensions (unpadded torch sizes and padded lane-friendly sizes)
# ----------------------------------------------------------------------------
D_IN, H1, H2, D_OUT = 60, 120, 60, 4
LANES = 128
D_IN_P, H1_P, H2_P, D_OUT_P = 64, 128, 128, 128   # zero-padded widths

# Single parameter slab layout (rows x 128 lanes).  Every section starts on an
# 8-sublane boundary so the in-kernel static slices never cross a tile edge.
W1_OFF = 0                      # rows [  0, 64)  : w1  (64 in -> 128 out)
B1_OFF = W1_OFF + D_IN_P        # rows [ 64, 72)  : b1  (row 64 used)
W2_OFF = B1_OFF + 8             # rows [ 72,200)  : w2  (128 -> 128)
B2_OFF = W2_OFF + H1_P          # rows [200,208)  : b2  (row 200 used)
W3_OFF = B2_OFF + 8             # rows [208,336)  : w3  (128 -> 128)
B3_OFF = W3_OFF + H2_P          # rows [336,344)  : b3  (row 336 used)
SLAB_ROWS = B3_OFF + 8          # 344 rows * 128 * 4B ~= 172 KiB

# Batch tiling
TB = 1024                       # rows per grid step for large batches


# ----------------------------------------------------------------------------
# Fused Pallas kernel: out = relu(relu(relu(x@w1+b1)@w2+b2)@w3+b3)
# ----------------------------------------------------------------------------
def _fused_mlp_kernel(x_ref, p_ref, o_ref):
    # Static, 8-aligned carves of the resident parameter slab (no data motion).
    w1 = p_ref[W1_OFF:W1_OFF + D_IN_P, :]      # (64, 128)
    b1 = p_ref[B1_OFF:B1_OFF + 1, :]           # (1, 128)
    w2 = p_ref[W2_OFF:W2_OFF + H1_P, :]        # (128, 128)
    b2 = p_ref[B2_OFF:B2_OFF + 1, :]           # (1, 128)
    w3 = p_ref[W3_OFF:W3_OFF + H2_P, :]        # (128, 128)
    b3 = p_ref[B3_OFF:B3_OFF + 1, :]           # (1, 128)

    h = jnp.dot(x_ref[...], w1, preferred_element_type=jnp.float32)
    h = jnp.maximum(h + b1, 0.0)                                   # (TB, 128)
    h = jnp.dot(h, w2, preferred_element_type=jnp.float32)
    h = jnp.maximum(h + b2, 0.0)                                   # (TB, 128)
    y = jnp.dot(h, w3, preferred_element_type=jnp.float32)
    y = jnp.maximum(y + b3, 0.0)                                   # (TB, 128)
    o_ref[...] = y.astype(o_ref.dtype)


def original_model_forward(x, params):
    """x: (B, 60) f32 -> (B, 4) f32, matching OriginalModel.forward."""
    B, D = x.shape
    assert D == D_IN
    x = x.astype(jnp.float32)
    # Pad K once in the wrapper: 60 -> 64 with zeros (inert for the matmul).
    xp = jnp.pad(x, ((0, 0), (0, D_IN_P - D_IN)))

    if B <= TB:
        # Tiny/medium batch: gridless single tile, everything VMEM-resident.
        tb, bp, grid = B, B, (1,)
    else:
        # Large batch: 1-D batch grid, weights stay resident, x/out pipelined.
        tb = TB
        bp = ((B + tb - 1) // tb) * tb
        if bp != B:
            xp = jnp.pad(xp, ((0, bp - B), (0, 0)))
        grid = (bp // tb,)

    out = pl.pallas_call(
        _fused_mlp_kernel,
        out_shape=jax.ShapeDtypeStruct((bp, D_OUT_P), jnp.float32),
        grid=grid,
        in_specs=[
            pl.BlockSpec((tb, D_IN_P), lambda i: (i, 0)),          # batch tile
            pl.BlockSpec((SLAB_ROWS, LANES), lambda i: (0, 0)),    # resident slab
        ],
        out_specs=pl.BlockSpec((tb, D_OUT_P), lambda i: (i, 0)),
        compiler_params=pltpu.CompilerParams(
            dimension_semantics=("parallel",),      # shard batch across TCs (v7x)
            vmem_limit_bytes=32 * 1024 * 1024,      # explicit, safe on v5e/v6e/v7x
        ),
    )(xp, params["slab"])
    # TODO(synk): for bandwidth-bound large-B consumers, emit (B, 4) directly
    # instead of the lane-dense padded output + wrapper slice.
    return out[:B, :D_OUT]


# ----------------------------------------------------------------------------
# Parameters: deterministic synthetic init (Gaussian/sqrt(fan_in); load real
# torch weights transposed to (in, out) to match an actual OriginalModel),
# packed ONCE into the padded slab so the hot path has no pads / reshapes.
# ----------------------------------------------------------------------------
def init_params(key):
    ks = jax.random.split(key, 6)

    def dense(kw, kb, fan_in, fan_out):
        w = jax.random.normal(kw, (fan_in, fan_out), jnp.float32) / jnp.sqrt(fan_in)
        b = jax.random.normal(kb, (fan_out,), jnp.float32) / jnp.sqrt(fan_in)
        return w, b

    w1, b1 = dense(ks[0], ks[1], D_IN, H1)     # (60, 120)
    w2, b2 = dense(ks[2], ks[3], H1, H2)       # (120, 60)
    w3, b3 = dense(ks[4], ks[5], H2, D_OUT)    # (60, 4)

    slab = jnp.zeros((SLAB_ROWS, LANES), jnp.float32)
    slab = slab.at[W1_OFF:W1_OFF + D_IN, :H1].set(w1)
    slab = slab.at[B1_OFF, :H1].set(b1)
    slab = slab.at[W2_OFF:W2_OFF + H1, :H2].set(w2)
    slab = slab.at[B2_OFF, :H2].set(b2)
    slab = slab.at[W3_OFF:W3_OFF + H2, :D_OUT].set(w3)
    slab = slab.at[B3_OFF, :D_OUT].set(b3)

    return {
        "slab": slab,
        # Unpadded copies kept only for the pure-JAX reference check.
        "w1": w1, "b1": b1, "w2": w2, "b2": b2, "w3": w3, "b3": b3,
    }


def _reference_forward(x, params):
    """Plain-JAX reference on the UNPADDED weights (ground-truth math)."""
    h = jnp.maximum(x @ params["w1"] + params["b1"], 0.0)
    h = jnp.maximum(h @ params["w2"] + params["b2"], 0.0)
    return jnp.maximum(h @ params["w3"] + params["b3"], 0.0)


if __name__ == "__main__":
    key = jax.random.PRNGKey(0)
    kx, kp = jax.random.split(key)
    x = jax.random.normal(kx, (2, D_IN), jnp.float32)   # batch=2, features=60
    params = init_params(kp)

    fwd = jax.jit(original_model_forward)
    out = jax.block_until_ready(fwd(x, params))

    assert out.shape == (2, D_OUT), out.shape
    assert out.dtype == jnp.float32

    ref = _reference_forward(x, params)
    assert jnp.allclose(out, ref, rtol=1e-3, atol=1e-3), (out, ref)

    print("KERNEL_OK")
</pallas_src>

<mosaic_0001>
module attributes {stable_mosaic.version = 11 : i64} {
  func.func @_fused_mlp_kernel(%arg0: i32, %arg1: memref<2x64xf32, #tpu.memory_space<vmem>>, %arg2: memref<344x128xf32, #tpu.memory_space<vmem>>, %arg3: memref<2x128xf32, #tpu.memory_space<vmem>>) attributes {dimension_semantics = [#tpu.dimension_semantics<parallel>], iteration_bounds = array<i64: 1>, scalar_prefetch = 0 : i64, scratch_operands = 0 : i64, tpu.core_type = #tpu.core_type<tc>, window_params = [{transform_indices = @transform_0, window_bounds = array<i64: 2, 64>}, {pipeline_mode = #tpu.pipeline_mode<synchronous>, transform_indices = @transform_1, window_bounds = array<i64: 344, 128>}, {transform_indices = @transform_2, window_bounds = array<i64: 2, 128>}]} {
    %c0 = arith.constant 0 : index
    %c0_0 = arith.constant 0 : index
    %0 = vector.load %arg2[%c0, %c0_0] : memref<344x128xf32, #tpu.memory_space<vmem>>, vector<64x128xf32>
    %c64 = arith.constant 64 : index
    %c0_1 = arith.constant 0 : index
    %1 = vector.load %arg2[%c64, %c0_1] : memref<344x128xf32, #tpu.memory_space<vmem>>, vector<1x128xf32>
    %c72 = arith.constant 72 : index
    %c0_2 = arith.constant 0 : index
    %2 = vector.load %arg2[%c72, %c0_2] : memref<344x128xf32, #tpu.memory_space<vmem>>, vector<128x128xf32>
    %c200 = arith.constant 200 : index
    %c0_3 = arith.constant 0 : index
    %3 = vector.load %arg2[%c200, %c0_3] : memref<344x128xf32, #tpu.memory_space<vmem>>, vector<1x128xf32>
    %c208 = arith.constant 208 : index
    %c0_4 = arith.constant 0 : index
    %4 = vector.load %arg2[%c208, %c0_4] : memref<344x128xf32, #tpu.memory_space<vmem>>, vector<128x128xf32>
    %c336 = arith.constant 336 : index
    %c0_5 = arith.constant 0 : index
    %5 = vector.load %arg2[%c336, %c0_5] : memref<344x128xf32, #tpu.memory_space<vmem>>, vector<1x128xf32>
    %c0_6 = arith.constant 0 : index
    %c0_7 = arith.constant 0 : index
    %6 = vector.load %arg1[%c0_6, %c0_7] : memref<2x64xf32, #tpu.memory_space<vmem>>, vector<2x64xf32>
    %cst = arith.constant dense<0.000000e+00> : vector<2x128xf32>
    %7 = tpu.matmul %6, %0, %cst {dimension_numbers = #tpu.dot_dimension_numbers<[1], [0], [0], [1], [0, 0, 1, 1], [], []>} : vector<2x64xf32>, vector<64x128xf32>, vector<2x128xf32> -> vector<2x128xf32>
    %8 = vector.broadcast %1 : vector<1x128xf32> to vector<2x128xf32>
    %9 = arith.addf %7, %8 : vector<2x128xf32>
    %cst_8 = arith.constant 0.000000e+00 : f32
    %10 = vector.broadcast %cst_8 : f32 to vector<2x128xf32>
    %11 = arith.maximumf %9, %10 : vector<2x128xf32>
    %cst_9 = arith.constant dense<0.000000e+00> : vector<2x128xf32>
    %12 = tpu.matmul %11, %2, %cst_9 {dimension_numbers = #tpu.dot_dimension_numbers<[1], [0], [0], [1], [0, 0, 1, 1], [], []>} : vector<2x128xf32>, vector<128x128xf32>, vector<2x128xf32> -> vector<2x128xf32>
    %13 = vector.broadcast %3 : vector<1x128xf32> to vector<2x128xf32>
    %14 = arith.addf %12, %13 : vector<2x128xf32>
    %cst_10 = arith.constant 0.000000e+00 : f32
    %15 = vector.broadcast %cst_10 : f32 to vector<2x128xf32>
    %16 = arith.maximumf %14, %15 : vector<2x128xf32>
    %cst_11 = arith.constant dense<0.000000e+00> : vector<2x128xf32>
    %17 = tpu.matmul %16, %4, %cst_11 {dimension_numbers = #tpu.dot_dimension_numbers<[1], [0], [0], [1], [0, 0, 1, 1], [], []>} : vector<2x128xf32>, vector<128x128xf32>, vector<2x128xf32> -> vector<2x128xf32>
    %18 = vector.broadcast %5 : vector<1x128xf32> to vector<2x128xf32>
    %19 = arith.addf %17, %18 : vector<2x128xf32>
    %cst_12 = arith.constant 0.000000e+00 : f32
    %20 = vector.broadcast %cst_12 : f32 to vector<2x128xf32>
    %21 = arith.maximumf %19, %20 : vector<2x128xf32>
    %c0_13 = arith.constant 0 : index
    %c0_14 = arith.constant 0 : index
    %22 = vector.load %arg3[%c0_13, %c0_14] : memref<2x128xf32, #tpu.memory_space<vmem>>, vector<2x128xf32>
    tpu.vector_store %arg3[%c0_13, %c0_14], %21 {strides = array<i32>} : memref<2x128xf32, #tpu.memory_space<vmem>>, vector<2x128xf32>,
    return
  }
  func.func @transform_0(%arg0: i32) -> (i32, i32) {
    %c0_i32 = arith.constant 0 : i32
    %c0_i32_0 = arith.constant 0 : i32
    return %arg0, %c0_i32 : i32, i32
  }
  func.func @transform_1(%arg0: i32) -> (i32, i32) {
    %c0_i32 = arith.constant 0 : i32
    %c0_i32_0 = arith.constant 0 : i32
    %c0_i32_1 = arith.constant 0 : i32
    return %c0_i32, %c0_i32_0 : i32, i32
  }
  func.func @transform_2(%arg0: i32) -> (i32, i32) {
    %c0_i32 = arith.constant 0 : i32
    %c0_i32_0 = arith.constant 0 : i32
    return %arg0, %c0_i32 : i32, i32
  }
}

</mosaic_0001>

<bundles_post_ra>
// kernel: original_model_forward.1
= control target key start
LH: loop header
LB: loop body
LE: loop exit
PB: predicated region body
PF: predicated region fallthrough
CT: control target
= control target key end

     0   :  { %7 = vsyncpa [#allocation3], 0  ;;  %s577_s0 = inlined_call_operand.vmem [shape: f32[2,64], index: 0, kind: input, shape index: {}]   ;;  %s578_s1 = inlined_call_operand.hbm [shape: f32[344,128], index: 1, kind: input, shape index: {}]   ;;  %s579_s2 = inlined_call_operand.hbm [shape: f32[2,128], index: 2, kind: output, shape index: {}]  }
   0x1   :  { %8 = vsyncpa [#allocation4], 0  ;;  %s501_s9 = smov [#allocation2]  }
   0x2   :  { %s16_s10 = sshll.u32 %s501_s9, 4  ;;  %s17_s10 = int_to_ptr.vmem [resolvable:$true] %s16_s10 }
   0x3   :  { %s465_s11 = scalar_lea.vmem %s17_s10, 5504  ;;  %p470_p1 = scmp.lt.s32.totalorder %s17_s10, %s17_s10 }
   0x4   :  { %p466_p0 = scmp.ne.s32.totalorder %s17_s10, %s465_s11  ;;  %p471_p2 = scmp.lt.s32.totalorder %s465_s11, %s465_s11 }
   0x6   :  { %p472_p3 = por %p471_p2, %p470_p1 }
   0x8   :  { %p473_p4 = pnand %p472_p3, %p466_p0 }
   0xa   :  { %476 = shalt.err (!%p473_p4)
}
   0xb   :  { %s502_s12 = smov 128   ;;  %s503_s13 = smov 8  }
   0xc   :  { %22 = dma.hbm_to_vmem [thread:$0]  %s578_s1, 5504, %s17_s10, [#allocation3], %s502_s12, %s502_s12, %s503_s13  }
   0xd   :  { %497 = dma.done.wait [#allocation3], 5504  }
   0xe   :  { %498 = vsyncadd [#allocation3], 4294961792  ;;  %v504_v0 = vmov 0.0   ;;  %vm505_vm0 = vmmov 0   ;;  %v33_v1 = vld [vmem:[#allocation2 + $0x38] sm:$0xff]  ;;  %v32_v2 = vld [vmem:[#allocation2 + $0x30] sm:$0xff] }
   0xf   :  { %362 = vmatprep.subr.mxu0 %v504_v0  ;;  %378 = vmatprep.mubr.msk.f32.mxu0 %vm505_vm0, %v504_v0  ;;  %v31_v3 = vld [vmem:[#allocation2 + $0x28] sm:$0xff]  ;;  %v50_v4 = vld [vmem:[#allocation2 + $0xc0] sm:$0xff]  ;;  %v49_v5 = vld [vmem:[#allocation2 + $0xb8] sm:$0xff]  ;;  %vm74_vm1 = vcmask 523264  }
  0x10   :  { %381 = vmatprep.subr.mxu1 %v504_v0  ;;  %413 = vmatprep.mubr.msk.f32.mxu1 %vm505_vm0, %v504_v0  ;;  %v30_v6 = vld [vmem:[#allocation2 + $0x20] sm:$0xff]  ;;  %v48_v7 = vld [vmem:[#allocation2 + $0xb0] sm:$0xff]  ;;  %v29_v8 = vld [vmem:[#allocation2 + $0x18] sm:$0xff] }
  0x11   :  { %363 = vmatpush3.msra.mxu0 %v33_v1  ;;  %382 = vmatpush3.msra.mxu1 %v50_v4  ;;  %v47_v9 = vld [vmem:[#allocation2 + $0xa8] sm:$0xff]  ;;  %v28_v10 = vld [vmem:[#allocation2 + $0x10] sm:$0xff]  ;;  %v46_v11 = vld [vmem:[#allocation2 + $0xa0] sm:$0xff] }
  0x12   :  { %364 = vmatprep.subr.mxu0 %v504_v0  ;;  %383 = vmatprep.subr.mxu1 %v504_v0  ;;  %v27_v12 = vld [vmem:[#allocation2 + $0x8] sm:$0xff]  ;;  %v45_v13 = vld [vmem:[#allocation2 + $0x98] sm:$0xff]  ;;  %v26_v14 = vld [vmem:[#allocation2] sm:$0xff] }
  0x13   :  { %365 = vmatpush3.msra.mxu0 %v32_v2  ;;  %384 = vmatpush3.msra.mxu1 %v49_v5  ;;  %v69_v15 = vld [vmem:[%s577_s0] sm:$0x3]  ;;  %v44_v16 = vld [vmem:[#allocation2 + $0x90] sm:$0xff]  ;;  %v43_v17 = vld [vmem:[#allocation2 + $0x88] sm:$0xff]  ;;  %s506_s0 = smov [#allocation5]  }
  0x14   :  { %366 = vmatprep.subr.mxu0 %v504_v0  ;;  %385 = vmatprep.subr.mxu1 %v504_v0  ;;  %v42_v18 = vld [vmem:[#allocation2 + $0x80] sm:$0xff]  ;;  %v41_v19 = vld [vmem:[#allocation2 + $0x78] sm:$0xff]  ;;  %v40_v20 = vld [vmem:[#allocation2 + $0x70] sm:$0xff]  ;;  %s306_s17 = sshll.u32 %s506_s0, 4  ;;  %s307_s17 = int_to_ptr.vmem [resolvable:$true] %s306_s17 }
  0x15   :  { %367 = vmatpush3.msra.mxu0 %v31_v3  ;;  %386 = vmatpush3.msra.mxu1 %v48_v7  ;;  %v39_v21 = vld [vmem:[#allocation2 + $0x68] sm:$0xff]  ;;  %v38_v22 = vld [vmem:[#allocation2 + $0x60] sm:$0xff]  ;;  %v37_v23 = vld [vmem:[#allocation2 + $0x58] sm:$0xff]  ;;  %s477_s18 = scalar_lea.vmem %s307_s17, 32  ;;  %p482_p6 = scmp.lt.s32.totalorder %s307_s17, %s307_s17 }
  0x16   :  { %368 = vmatprep.subr.mxu0 %v504_v0  ;;  %387 = vmatprep.subr.mxu1 %v504_v0  ;;  %v36_v24 = vld [vmem:[#allocation2 + $0x50] sm:$0xff]  ;;  %v35_v25 = vld [vmem:[#allocation2 + $0x48] sm:$0xff]  ;;  %v66_v27 = vld [vmem:[#allocation2 + $0x140] sm:$0xff]  ;;  %p478_p5 = scmp.ne.s32.totalorder %s307_s17, %s477_s18  ;;  %p483_p7 = scmp.lt.s32.totalorder %s477_s18, %s477_s18 }
  0x17   :  { %369 = vmatpush3.msra.mxu0 %v30_v6  ;;  %388 = vmatpush3.msra.mxu1 %v47_v9  ;;  %v67_v26 = vld [vmem:[#allocation2 + $0x148] sm:$0xff]  ;;  %v65_v28 = vld [vmem:[#allocation2 + $0x138] sm:$0xff]  ;;  %v64_v29 = vld [vmem:[#allocation2 + $0x130] sm:$0xff] }
  0x18   :  { %370 = vmatprep.subr.mxu0 %v504_v0  ;;  %389 = vmatprep.subr.mxu1 %v504_v0  ;;  %v63_v30 = vld [vmem:[#allocation2 + $0x128] sm:$0xff]  ;;  %v62_v31 = vld [vmem:[#allocation2 + $0x120] sm:$0xff]  ;;  %v61_v32 = vld [vmem:[#allocation2 + $0x118] sm:$0xff]  ;;  %p484_p8 = por %p483_p7, %p482_p6 }
  0x19   :  { %371 = vmatpush3.msra.mxu0 %v29_v8  ;;  %390 = vmatpush3.msra.mxu1 %v46_v11  ;;  %v60_v33 = vld [vmem:[#allocation2 + $0x110] sm:$0xff]  ;;  %v59_v34 = vld [vmem:[#allocation2 + $0x108] sm:$0xff]  ;;  %v58_v35 = vld [vmem:[#allocation2 + $0x100] sm:$0xff] }
  0x1a   :  { %372 = vmatprep.subr.mxu0 %v504_v0  ;;  %391 = vmatprep.subr.mxu1 %v504_v0  ;;  %v57_v36 = vld [vmem:[#allocation2 + $0xf8] sm:$0xff]  ;;  %v56_v37 = vld [vmem:[#allocation2 + $0xf0] sm:$0xff]  ;;  %v55_v38 = vld [vmem:[#allocation2 + $0xe8] sm:$0xff]  ;;  %p485_p9 = pnand %p484_p8, %p478_p5 }
  0x1b   :  { %373 = vmatpush3.msra.mxu0 %v28_v10  ;;  %392 = vmatpush3.msra.mxu1 %v45_v13  ;;  %v315_v39 = vld [vmem:[#allocation2 + $0x40] ss:$0 sm:$0xff]  ;;  %v53_v45 = vld [vmem:[#allocation2 + $0xd8] sm:$0xff]  ;;  %v52_v46 = vld [vmem:[#allocation2 + $0xd0] sm:$0xff] }
  0x1c   :  { %374 = vmatprep.subr.mxu0 %v504_v0  ;;  %393 = vmatprep.subr.mxu1 %v504_v0  ;;  %v54_v44 = vld [vmem:[#allocation2 + $0xe0] sm:$0xff]  ;;  %v317_v47 = vld [vmem:[#allocation2 + $0xc8] ss:$0 sm:$0xff]  ;;  %v318_v52 = vld [vmem:[#allocation2 + $0x150] ss:$0 sm:$0xff] }
  0x1d   :  { %375 = vmatpush3.msra.mxu0 %v27_v12  ;;  %394 = vmatpush3.msra.mxu1 %v44_v16 }
  0x1e   :  { %376 = vmatprep.subr.mxu0 %v504_v0  ;;  %395 = vmatprep.subr.mxu1 %v504_v0 }
  0x1f   :  { %377 = vmatpush3.msra.mxu0 %v26_v14  ;;  %396 = vmatpush3.msra.mxu1 %v43_v17 }
  0x20   :  { %379 = vmatmul.mubr.msk.f32.vlgmr.msra.gmra.mxu0 %vm74_vm1, %v69_v15  ;;  %416 = vmatprep.subr.mxu0 %v504_v0 }
  0x21   :  { %448 = vmatprep.mubr.msk.f32.mxu0 %vm505_vm0, %v504_v0  ;;  %397 = vmatprep.subr.mxu1 %v504_v0 }
  0x22   :  { %398 = vmatpush3.msra.mxu1 %v42_v18  ;;  %417 = vmatpush3.msra.mxu0 %v67_v26 }
  0x23   :  { %399 = vmatprep.subr.mxu1 %v504_v0  ;;  %418 = vmatprep.subr.mxu0 %v504_v0 }
  0x24   :  { %400 = vmatpush3.msra.mxu1 %v41_v19  ;;  %419 = vmatpush3.msra.mxu0 %v66_v27 }
  0x25   :  { %401 = vmatprep.subr.mxu1 %v504_v0  ;;  %420 = vmatprep.subr.mxu0 %v504_v0 }
  0x26   :  { %402 = vmatpush3.msra.mxu1 %v40_v20  ;;  %421 = vmatpush3.msra.mxu0 %v65_v28 }
  0x27   :  { %403 = vmatprep.subr.mxu1 %v504_v0  ;;  %422 = vmatprep.subr.mxu0 %v504_v0 }
  0x28   :  { %404 = vmatpush3.msra.mxu1 %v39_v21  ;;  %423 = vmatpush3.msra.mxu0 %v64_v29 }
  0x29   :  { %405 = vmatprep.subr.mxu1 %v504_v0  ;;  %424 = vmatprep.subr.mxu0 %v504_v0 }
  0x2a   :  { %406 = vmatpush3.msra.mxu1 %v38_v22  ;;  %425 = vmatpush3.msra.mxu0 %v63_v30 }
  0x2b   :  { %407 = vmatprep.subr.mxu1 %v504_v0  ;;  %426 = vmatprep.subr.mxu0 %v504_v0 }
  0x2c   :  { %408 = vmatpush3.msra.mxu1 %v37_v23  ;;  %427 = vmatpush3.msra.mxu0 %v62_v31 }
  0x2d   :  { %409 = vmatprep.subr.mxu1 %v504_v0  ;;  %428 = vmatprep.subr.mxu0 %v504_v0 }
  0x2e   :  { %410 = vmatpush3.msra.mxu1 %v36_v24  ;;  %429 = vmatpush3.msra.mxu0 %v61_v32 }
  0x2f   :  { %411 = vmatprep.subr.mxu1 %v504_v0  ;;  %430 = vmatprep.subr.mxu0 %v504_v0 }
  0x30   :  { %412 = vmatpush3.msra.mxu1 %v35_v25  ;;  %431 = vmatpush3.msra.mxu0 %v60_v33 }
  0x31   :  { %432 = vmatprep.subr.mxu0 %v504_v0 }
  0x32   :  { %433 = vmatpush3.msra.mxu0 %v59_v34 }
  0x33   :  { %434 = vmatprep.subr.mxu0 %v504_v0 }
  0x34   :  { %435 = vmatpush3.msra.mxu0 %v58_v35 }
  0x35   :  { %436 = vmatprep.subr.mxu0 %v504_v0 }
  0x36   :  { %437 = vmatpush3.msra.mxu0 %v57_v36 }
  0x37   :  { %438 = vmatprep.subr.mxu0 %v504_v0 }
  0x38   :  { %439 = vmatpush3.msra.mxu0 %v56_v37 }
  0x39   :  { %440 = vmatprep.subr.mxu0 %v504_v0 }
  0x3a   :  { %441 = vmatpush3.msra.mxu0 %v55_v38 }
  0x3b   :  { %442 = vmatprep.subr.mxu0 %v504_v0 }
  0x3c   :  { %443 = vmatpush3.msra.mxu0 %v54_v44 }
  0x3d   :  { %444 = vmatprep.subr.mxu0 %v504_v0 }
  0x3e   :  { %445 = vmatpush3.msra.mxu0 %v53_v45 }
  0x3f   :  { %446 = vmatprep.subr.mxu0 %v504_v0 }
  0x40   :  { %447 = vmatpush3.msra.mxu0 %v52_v46 }
  0xe0   :  { %v144_v40 = vpop.f32.mrf.mxu0 }
  0xe1   :  { %v145_v41 = vadd.f32 %v315_v39, %v144_v40 }
  0xe2   :  { %v380_v42 = vpop.f32.mrf.mxu0 }
  0xe3   :  { %v148_v43 = vmax.f32 %v145_v41, 0.0 }
  0xe5   :  { %414 = vmatmul.mubr.f32.vlgmr.msra.gmra.mxu1 %v148_v43 }
 0x1a5   :  { %v219_v48 = vpop.f32.mrf.mxu1 }
 0x1a6   :  { %v220_v49 = vadd.f32 %v317_v47, %v219_v48 }
 0x1a7   :  { %v415_v50 = vpop.f32.mrf.mxu1 }
 0x1a8   :  { %v223_v51 = vmax.f32 %v220_v49, 0.0 }
 0x1aa   :  { %449 = vmatmul.mubr.f32.vlgmr.msra.gmra.mxu0 %v223_v51 }
 0x26a   :  { %v294_v53 = vpop.f32.mrf.mxu0 }
 0x26b   :  { %v295_v54 = vadd.f32 %v318_v52, %v294_v53 }
 0x26c   :  { %v450_v55 = vpop.f32.mrf.mxu0 }
 0x26d   :  { %v298_v56 = vmax.f32 %v295_v54, 0.0 }
 0x26f   :  { %299 = vst [vmem:[#allocation5] sm:$0x3] %v298_v56 }
 0x270   :  { %488 = shalt.err (!%p485_p9)
}
 0x271   :  { %309 = dma.vmem_to_hbm [thread:$0]  %s307_s17, 32, %s579_s2, [#allocation4]  }
 0x272   :  { %499 = dma.done.wait [#allocation4], 32  }
 0x273   :  { %500 = vsyncadd [#allocation4], 4294967264 }
 0x274   :  { %313 = vsyncpa [#allocation3], 1 }
 0x275   :  { %314 = vsyncpa [#allocation4], 1 }

</bundles_post_ra>
